<compile_context>
chip_gen: v7x
topology: tpu7x:2x2x1
jax: 0.10.0
libtpu: 0.0.40
codegen_flags: <defaults>
</compile_context>

<pallas_src>
import jax
import jax.numpy as jnp
from jax.experimental import pallas as pl
from jax.experimental.pallas import tpu as pltpu


# ----------------------------------------------------------------------------
# Pallas kernels
# ----------------------------------------------------------------------------
def _project_scale_kernel(x_ref, w_ref, dinv_ref, o_ref):
    """o_t = D^{-1/2}_t * (x_t @ W)   (bf16 MXU operands, f32 accumulation)."""
    h = jnp.dot(x_ref[...], w_ref[...],
                preferred_element_type=jnp.float32)            # [T, OUT] f32
    o_ref[...] = (dinv_ref[...] * h).astype(o_ref.dtype)       # emit bf16 once


def _propagate_kernel(adj_ref, g_ref, scale_ref, o_ref):
    """o_t = scale_t * (adj_t @ g)   adj int8 widened to bf16, g bf16, f32 accum."""
    agg = jnp.dot(adj_ref[...].astype(jnp.bfloat16),           # [T, N] i8 -> bf16
                  g_ref[...],                                  # [N, OUT] bf16 (resident)
                  preferred_element_type=jnp.float32)          # [T, OUT] f32
    o_ref[...] = (scale_ref[...] * agg).astype(o_ref.dtype)


# ----------------------------------------------------------------------------
# Generation-aware sizing helpers.
# ----------------------------------------------------------------------------
def _pick_vmem_limit():
    try:
        phys = pltpu.get_tpu_info().vmem_capacity_bytes
    except Exception:
        phys = 64 * 1024 * 1024                  # conservative (v7x per-TC)
    return min(int(phys * 3) // 4, 100 * 1024 * 1024)


def _choose_tile_t(n, adj_itemsize, vmem_limit):
    """Largest row tile (multiple of 128, dividing N) whose double-buffered adj
    slab stays within ~half the scoped VMEM budget."""
    if n <= 128 or n % 128 != 0:
        return n                                 # tiny / odd N: single tile (full dims)
    budget = vmem_limit // 2
    cap = max(128, (budget // (2 * n * adj_itemsize)) // 128 * 128)
    best = 128
    for cand in range(128, min(cap, n) + 1, 128):
        if n % cand == 0:
            best = cand
    return best


# ----------------------------------------------------------------------------
# Wrapper: SGConv(K, bias=False) forward, row-tiled over destination nodes.
# ----------------------------------------------------------------------------
def netencode_forward(x, edge_index, w_sgc, *, k=2, tile_t=None):
    n, in_dim = x.shape
    out_dim = w_sgc.shape[1]

    # ---- plain-JAX glue -----------------------------------------------------
    adj = build_adjacency(edge_index, n, dtype=jnp.int8)        # [N, N] 0/1 int8
    # O(E) in-degree (incl. self loop); assumes no duplicate edges / self loops.
    deg = jnp.zeros((n,), jnp.float32).at[edge_index[1]].add(1.0) + 1.0
    deg = deg[:, None]                                          # [N, 1]
    dinv = jnp.where(deg > 0, jax.lax.rsqrt(deg), 0.0)          # [N, 1] f32

    x_bf16 = x.astype(jnp.bfloat16)                             # cast once, not per tile
    w_bf16 = w_sgc.astype(jnp.bfloat16)

    vmem_limit = _pick_vmem_limit()
    if tile_t is None:
        tile_t = _choose_tile_t(n, adj.dtype.itemsize, vmem_limit)
    tile_t = min(tile_t, n)
    assert n % tile_t == 0, "tile_t must divide N"
    assert tile_t == n or tile_t % 128 == 0, \
        "tile_t must be a multiple of 128 (MXU row dim / packed layouts) or == N"

    grid = (pl.cdiv(n, tile_t),)
    cparams = pltpu.CompilerParams(
        dimension_semantics=("parallel",),       # shard row tiles across TCs (v7x megacore)
        vmem_limit_bytes=vmem_limit,
    )

    def row_spec(bs):
        return pl.BlockSpec(bs, lambda i: (i, 0))

    def full_spec(bs):
        return pl.BlockSpec(bs, lambda i: (0, 0))   # resident across all row tiles

    # ---- stage 0: g = D^{-1/2} (x @ W), emitted in bf16 ---------------------
    g = pl.pallas_call(
        _project_scale_kernel,
        out_shape=jax.ShapeDtypeStruct((n, out_dim), jnp.bfloat16),
        grid=grid,
        in_specs=[row_spec((tile_t, in_dim)),
                  full_spec((in_dim, out_dim)),
                  row_spec((tile_t, 1))],
        out_specs=row_spec((tile_t, out_dim)),
        compiler_params=cparams,
    )(x_bf16, w_bf16, dinv)

    # ---- stages 1..K: g <- scale * (A g) ------------------------------------
    #   non-final hop: scale = D^{-1}   (result stays pre-scaled by D^{-1/2}), bf16 out
    #   final hop:     scale = D^{-1/2} (result is S^K x W exactly), f32 out
    for step in range(k):
        final = step == k - 1
        scale = dinv if final else dinv * dinv
        g = pl.pallas_call(
            _propagate_kernel,
            out_shape=jax.ShapeDtypeStruct(
                (n, out_dim), jnp.float32 if final else jnp.bfloat16),
            grid=grid,
            in_specs=[row_spec((tile_t, n)),      # adj row tile, int8, pipelined
                      full_spec((n, out_dim)),    # carried activations, bf16, resident
                      row_spec((tile_t, 1))],
            out_specs=row_spec((tile_t, out_dim)),
            compiler_params=cparams,
        )(adj, g, scale)
    return g


# ----------------------------------------------------------------------------
# Glue: dense adjacency with self loops, built directly in the streaming dtype
# (PyG semantics: adj[dst, src] = 1, message src -> dst).
# ----------------------------------------------------------------------------
def build_adjacency(edge_index, num_nodes, dtype=jnp.int8):
    src, dst = edge_index[0], edge_index[1]
    diag = jnp.arange(num_nodes)
    adj = jnp.zeros((num_nodes, num_nodes), dtype)
    adj = adj.at[dst, src].set(1)          # edges (parallel edges collapse to 1)
    adj = adj.at[diag, diag].set(1)        # add self loops
    return adj


# ----------------------------------------------------------------------------
# Pure-JAX f32 reference (module semantics: propagate K times, then Linear).
# ----------------------------------------------------------------------------
def netencode_reference(x, adj, w_sgc, *, k=2):
    deg = jnp.sum(adj, axis=1, keepdims=True)
    dinv = jnp.where(deg > 0, 1.0 / jnp.sqrt(deg), 0.0)
    s = dinv * adj * dinv.T
    h = x
    for _ in range(k):
        h = s @ h
    return h @ w_sgc


if __name__ == "__main__":
    N, IN_DIM, OUT_DIM, K = 256, 256, 64, 2     # module defaults: in_dim=256, out_dim=64, K=2

    key = jax.random.PRNGKey(0)
    k_x, k_w = jax.random.split(key)

    x = jax.random.normal(k_x, (N, IN_DIM), jnp.float32)

    # deterministic bidirectional ring graph: i -> (i+1)%N and i -> (i-1)%N
    src = jnp.concatenate([jnp.arange(N), jnp.arange(N)])
    dst = jnp.concatenate([(jnp.arange(N) + 1) % N, (jnp.arange(N) - 1) % N])
    edge_index = jnp.stack([src, dst]).astype(jnp.int32)        # [2, 512], no dup edges

    # SGConv linear weight (bias=False).  NetEncode.init_randn_uni is an unused
    # helper in the module; any weight exercises the same forward pass.
    w_sgc = jax.random.normal(k_w, (IN_DIM, OUT_DIM), jnp.float32) / jnp.sqrt(IN_DIM)

    # tile_t=128 -> grid of 2 row tiles (even split across v7x TensorCores).
    out = jax.block_until_ready(
        netencode_forward(x, edge_index, w_sgc, k=K, tile_t=128))

    ref = jax.block_until_ready(
        netencode_reference(x, build_adjacency(edge_index, N, dtype=jnp.float32),
                            w_sgc, k=K))
    assert out.shape == (N, OUT_DIM)
    # bf16 MXU operands / bf16-carried activations vs pure-f32 reference.
    max_err = float(jnp.max(jnp.abs(out - ref)))
    assert jnp.allclose(out, ref, atol=5e-2, rtol=5e-2), f"max abs err {max_err}"

    print("KERNEL_OK")
</pallas_src>

<mosaic_0001>
module attributes {stable_mosaic.version = 11 : i64} {
  func.func @_project_scale_kernel(%arg0: i32, %arg1: memref<128x256xbf16, #tpu.memory_space<vmem>>, %arg2: memref<256x64xbf16, #tpu.memory_space<vmem>>, %arg3: memref<128x1xf32, #tpu.memory_space<vmem>>, %arg4: memref<128x64xbf16, #tpu.memory_space<vmem>>) attributes {dimension_semantics = [#tpu.dimension_semantics<parallel>], iteration_bounds = array<i64: 2>, scalar_prefetch = 0 : i64, scratch_operands = 0 : i64, tpu.core_type = #tpu.core_type<tc>, window_params = [{transform_indices = @transform_0, window_bounds = array<i64: 128, 256>}, {pipeline_mode = #tpu.pipeline_mode<synchronous>, transform_indices = @transform_1, window_bounds = array<i64: 256, 64>}, {transform_indices = @transform_2, window_bounds = array<i64: 128, 1>}, {transform_indices = @transform_3, window_bounds = array<i64: 128, 64>}]} {
    %c0 = arith.constant 0 : index
    %c0_0 = arith.constant 0 : index
    %0 = vector.load %arg1[%c0, %c0_0] : memref<128x256xbf16, #tpu.memory_space<vmem>>, vector<128x256xbf16>
    %c0_1 = arith.constant 0 : index
    %c0_2 = arith.constant 0 : index
    %1 = vector.load %arg2[%c0_1, %c0_2] : memref<256x64xbf16, #tpu.memory_space<vmem>>, vector<256x64xbf16>
    %cst = arith.constant dense<0.000000e+00> : vector<128x64xf32>
    %2 = tpu.matmul %0, %1, %cst {dimension_numbers = #tpu.dot_dimension_numbers<[1], [0], [0], [1], [0, 0, 1, 1], [], []>} : vector<128x256xbf16>, vector<256x64xbf16>, vector<128x64xf32> -> vector<128x64xf32>
    %c0_3 = arith.constant 0 : index
    %c0_4 = arith.constant 0 : index
    %3 = vector.load %arg3[%c0_3, %c0_4] : memref<128x1xf32, #tpu.memory_space<vmem>>, vector<128x1xf32>
    %4 = vector.broadcast %3 : vector<128x1xf32> to vector<128x64xf32>
    %5 = arith.mulf %4, %2 : vector<128x64xf32>
    %6 = arith.truncf %5 : vector<128x64xf32> to vector<128x64xbf16>
    %c0_5 = arith.constant 0 : index
    %c0_6 = arith.constant 0 : index
    %7 = vector.load %arg4[%c0_5, %c0_6] : memref<128x64xbf16, #tpu.memory_space<vmem>>, vector<128x64xbf16>
    tpu.vector_store %arg4[%c0_5, %c0_6], %6 {strides = array<i32>} : memref<128x64xbf16, #tpu.memory_space<vmem>>, vector<128x64xbf16>,
    return
  }
  func.func @transform_0(%arg0: i32) -> (i32, i32) {
    %c0_i32 = arith.constant 0 : i32
    %c0_i32_0 = arith.constant 0 : i32
    return %arg0, %c0_i32 : i32, i32
  }
  func.func @transform_1(%arg0: i32) -> (i32, i32) {
    %c0_i32 = arith.constant 0 : i32
    %c0_i32_0 = arith.constant 0 : i32
    %c0_i32_1 = arith.constant 0 : i32
    return %c0_i32, %c0_i32_0 : i32, i32
  }
  func.func @transform_2(%arg0: i32) -> (i32, i32) {
    %c0_i32 = arith.constant 0 : i32
    %c0_i32_0 = arith.constant 0 : i32
    return %arg0, %c0_i32 : i32, i32
  }
  func.func @transform_3(%arg0: i32) -> (i32, i32) {
    %c0_i32 = arith.constant 0 : i32
    %c0_i32_0 = arith.constant 0 : i32
    return %arg0, %c0_i32 : i32, i32
  }
}

</mosaic_0001>

<bundles_post_ra>
// kernel: tpu_custom_call.1
= control target key start
LH: loop header
LB: loop body
LE: loop exit
PB: predicated region body
PF: predicated region fallthrough
CT: control target
= control target key end

     0   :  { %s1021_s12 = smov 0   ;;  %s1175_s0 = inlined_call_operand.vmem [shape: bf16[256,256], index: 0, kind: input, shape index: {}]   ;;  %s1176_s1 = inlined_call_operand.vmem [shape: bf16[256,64], index: 1, kind: input, shape index: {}]   ;;  %s1177_s2 = inlined_call_operand.vmem [shape: f32[256,1], index: 2, kind: input, shape index: {}]   ;;  %s1178_s3 = inlined_call_operand.vmem [shape: bf16[256,64], index: 3, kind: output, shape index: {}]  }
   0x1 LB: > { %s782_s13 = sadd.s32 4294967295, %s998_s12   ;;  %p786_p0 = scmp.ge.s32.totalorder %s998_s12, 1  ;;  %s998_s12 = sphi %s1021_s12, %s13_s12  }
   0x2   : > { %p150_p1 = scmp.lt.s32.totalorder %s998_s12, 3 }
   0x4   : > { %p151_p2 = pnand %p786_p0, %p150_p1 }
   0x5   : > { %v952_v0 = vld [vmem:[%s1176_s1 + $0x40] sm:$0xff] (!%p151_p2)   ;;  %s787_s16 = sshll.u32 (!%p151_p2), %s782_s13, 4  ;;  %v954_v2 = vld [vmem:[%s1176_s1 + $0x48] sm:$0xff] (!%p151_p2)   ;;  %v956_v4 = vld [vmem:[%s1176_s1 + $0x50] sm:$0xff] (!%p151_p2)   ;;  %v1000_v5 = vmov (!%p151_p2), 0   ;;  %vm697_vm0 = vcmask (!%p151_p2), 519168  }
   0x6   : > { %154 = sbr.rel (%p151_p2) target bundleno = 284 (0x11c), region = 32  ;;  %v953_v1 = vld [vmem:[%s1176_s1] sm:$0xff] (!%p151_p2)   ;;  %861 = vmatprep.subr.bf16.mxu0 (!%p151_p2), %v952_v0  ;;  %925 = vmatprep.subr.bf16.mxu1 (!%p151_p2), %v952_v0  ;;  %v955_v3 = vld [vmem:[%s1176_s1 + $0x8] sm:$0xff] (!%p151_p2)   ;;  %p181_p3 = scmp.lt.s32.totalorder (!%p151_p2), %s787_s16, 31  ;;  %v957_v6 = vld [vmem:[%s1176_s1 + $0x10] sm:$0xff] (!%p151_p2)  }
   0x7   : > { %862 = vmatpush3.bf16.msra.mxu0 (!%p151_p2), %v953_v1  ;;  %933 = vmatpush3.bf16.msra.mxu1 (!%p151_p2), %v953_v1  ;;  %v958_v7 = vld [vmem:[%s1176_s1 + $0x58] sm:$0xff] (!%p151_p2)   ;;  %v960_v9 = vld [vmem:[%s1176_s1 + $0x60] sm:$0xff] (!%p151_p2)   ;;  %v962_v11 = vld [vmem:[%s1176_s1 + $0x68] sm:$0xff] (!%p151_p2)  }
   0x8   : > { %863 = vmatprep.subr.bf16.mxu0 (!%p151_p2), %v954_v2  ;;  %926 = vmatprep.subr.bf16.mxu1 (!%p151_p2), %v954_v2  ;;  %v959_v8 = vld [vmem:[%s1176_s1 + $0x18] sm:$0xff] (!%p151_p2)   ;;  %v961_v10 = vld [vmem:[%s1176_s1 + $0x20] sm:$0xff] (!%p151_p2)   ;;  %v963_v14 = vld [vmem:[%s1176_s1 + $0x28] sm:$0xff] (!%p151_p2)  }
   0x9   : > { %951 = vset.pattern.permute.xlu1 (!%p151_p2), %v1000_v5  ;;  %950 = vset.pattern.permute.xlu0 (!%p151_p2), %v1000_v5  ;;  %v964_v15 = vld [vmem:[%s1176_s1 + $0x70] sm:$0xff] (!%p151_p2)   ;;  %v966_v17 = vld [vmem:[%s1176_s1 + $0x78] sm:$0xff] (!%p151_p2)  }
   0xa   : > { %v965_v16 = vld [vmem:[%s1176_s1 + $0x30] sm:$0xff] (!%p151_p2)   ;;  %v967_v19 = vld [vmem:[%s1176_s1 + $0x38] sm:$0xff] (!%p151_p2)  }
   0xb   : > { %864 = vmatpush3.bf16.msra.mxu0 (!%p151_p2), %v955_v3  ;;  %934 = vmatpush3.bf16.msra.mxu1 (!%p151_p2), %v955_v3 }
   0xc   : > { %865 = vmatprep.subr.bf16.mxu0 (!%p151_p2), %v956_v4  ;;  %927 = vmatprep.subr.bf16.mxu1 (!%p151_p2), %v956_v4 }
   0xd   : > { %s1180_s16 = smov (!%p181_p3, %s787_s16), 31 }
   0xe   : > { %s844_s4 = sshll.u32 %s1180_s16, 3  ;;  %s793_s29 = sshll.u32 %s1180_s16, 2 }
   0xf   : > { %866 = vmatpush3.bf16.msra.mxu0 %v957_v6  ;;  %935 = vmatpush3.bf16.msra.mxu1 %v957_v6  ;;  %s1062_s9 = scalar_lea.vmem %s1175_s0, %s844_s4  ;;  %s1084_s24 = scalar_lea.vmem %s1177_s2, %s844_s4 }
  0x10   : > { %867 = vmatprep.subr.bf16.mxu0 %v958_v7  ;;  %928 = vmatprep.subr.bf16.mxu1 %v958_v7  ;;  %v970_v12 = vld [vmem:[%s1062_s9 + $0x4] ss:$8 sps:$4 sm:$0xff]   ;;  %v523_v18 = vld [vmem:[%s1084_s24 + $0x10] sm:$0xff]  ;;  %v968_v21 = vld [vmem:[%s1062_s9] ss:$8 sps:$4 sm:$0xff]   ;;  %s1134_s5 = scalar_lea.vmem %s1178_s3, %s793_s29 }
  0x11   : > { %v973_v13 = vld [vmem:[%s1062_s9 + $0x44] ss:$8 sps:$4 sm:$0xff]   ;;  %456 = vmatprep.mubr.bf16.mxu0 %v970_v12  ;;  %549 = vperm.xlu1 %951, %v523_v18   ;;  %v971_v22 = vld [vmem:[%s1062_s9 + $0x40] ss:$8 sps:$4 sm:$0xff]   ;;  %v524_v23 = vld [vmem:[%s1084_s24 + $0x18] sm:$0xff] }
  0x12   : > { %488 = vmatprep.mubr.bf16.mxu1 %v973_v13  ;;  %v521_v20 = vld [vmem:[%s1084_s24] sm:$0xff]  ;;  %v522_v24 = vld [vmem:[%s1084_s24 + $0x8] sm:$0xff]  ;;  %v974_v25 = vld [vmem:[%s1062_s9 + $0x14] ss:$8 sps:$4 sm:$0xff]  }
  0x13   : > { %868 = vmatpush3.bf16.msra.mxu0 %v959_v8  ;;  %936 = vmatpush3.bf16.msra.mxu1 %v959_v8  ;;  %v976_v26 = vld [vmem:[%s1062_s9 + $0x54] ss:$8 sps:$4 sm:$0xff]   ;;  %v526_v27 = vld [vmem:[%s1084_s24 + $0x28] sm:$0xff]  ;;  %v525_v28 = vld [vmem:[%s1084_s24 + $0x20] sm:$0xff] }
  0x14   : > { %869 = vmatprep.subr.bf16.mxu0 %v960_v9  ;;  %929 = vmatprep.subr.bf16.mxu1 %v960_v9  ;;  %v978_v29 = vld [vmem:[%s1062_s9 + $0x10] ss:$8 sps:$4 sm:$0xff]   ;;  %v980_v33 = vld [vmem:[%s1062_s9 + $0x24] ss:$8 sps:$4 sm:$0xff]   ;;  %v984_v37 = vld [vmem:[%s1062_s9 + $0x20] ss:$8 sps:$4 sm:$0xff]  }
  0x15   : > { %539 = vperm.xlu0 %950, %v521_v20   ;;  %554 = vperm.xlu1 %951, %v524_v23   ;;  %v979_v30 = vld [vmem:[%s1062_s9 + $0x50] ss:$8 sps:$4 sm:$0xff]   ;;  %v982_v34 = vld [vmem:[%s1062_s9 + $0x64] ss:$8 sps:$4 sm:$0xff]   ;;  %v985_v38 = vld [vmem:[%s1062_s9 + $0x60] ss:$8 sps:$4 sm:$0xff]  }
  0x16   : > { %v528_v31 = vld [vmem:[%s1084_s24 + $0x38] sm:$0xff]  ;;  %v527_v32 = vld [vmem:[%s1084_s24 + $0x30] sm:$0xff]  ;;  %v530_v35 = vld [vmem:[%s1084_s24 + $0x48] sm:$0xff] }
  0x17   : > { %870 = vmatpush3.bf16.msra.mxu0 %v961_v10  ;;  %937 = vmatpush3.bf16.msra.mxu1 %v961_v10  ;;  %v529_v36 = vld [vmem:[%s1084_s24 + $0x40] sm:$0xff]  ;;  %v532_v39 = vld [vmem:[%s1084_s24 + $0x58] sm:$0xff]  ;;  %v531_v40 = vld [vmem:[%s1084_s24 + $0x50] sm:$0xff] }
  0x18   : > { %871 = vmatprep.subr.bf16.mxu0 %v962_v11  ;;  %930 = vmatprep.subr.bf16.mxu1 %v962_v11  ;;  %v986_v41 = vld [vmem:[%s1062_s9 + $0x34] ss:$8 sps:$4 sm:$0xff]   ;;  %v534_v43 = vld [vmem:[%s1084_s24 + $0x68] sm:$0xff]  ;;  %v533_v44 = vld [vmem:[%s1084_s24 + $0x60] sm:$0xff] }
  0x19   : > { %544 = vperm.xlu0 %950, %v522_v24   ;;  %564 = vperm.xlu1 %951, %v526_v27   ;;  %v988_v42 = vld [vmem:[%s1062_s9 + $0x74] ss:$8 sps:$4 sm:$0xff]   ;;  %v990_v45 = vld [vmem:[%s1062_s9 + $0x30] ss:$8 sps:$4 sm:$0xff]  }
  0x1a   : > { %v991_v46 = vld [vmem:[%s1062_s9 + $0x70] ss:$8 sps:$4 sm:$0xff]  }
  0x1b   : > { %872 = vmatpush3.bf16.msra.mxu0 %v963_v14  ;;  %938 = vmatpush3.bf16.msra.mxu1 %v963_v14  ;;  %v536_v47 = vld [vmem:[%s1084_s24 + $0x78] sm:$0xff]  ;;  %v535_v48 = vld [vmem:[%s1084_s24 + $0x70] sm:$0xff] }
  0x1c   : > { %873 = vmatprep.subr.bf16.mxu0 %v964_v15  ;;  %931 = vmatprep.subr.bf16.mxu1 %v964_v15 }
  0x1d   : > { %559 = vperm.xlu0 %950, %v525_v28   ;;  %574 = vperm.xlu1 %951, %v528_v31  }
  0x1f   : > { %874 = vmatpush3.bf16.msra.mxu0 %v965_v16  ;;  %939 = vmatpush3.bf16.msra.mxu1 %v965_v16 }
  0x20   : > { %875 = vmatprep.subr.bf16.mxu0 %v966_v17  ;;  %932 = vmatprep.subr.bf16.mxu1 %v966_v17 }
  0x21   : > { %569 = vperm.xlu0 %950, %v527_v32   ;;  %584 = vperm.xlu1 %951, %v530_v35  }
  0x23   : > { %876 = vmatpush3.bf16.msra.mxu0 %v967_v19  ;;  %940 = vmatpush3.bf16.msra.mxu1 %v967_v19 }
  0x25   : > { %579 = vperm.xlu0 %950, %v529_v36   ;;  %594 = vperm.xlu1 %951, %v532_v39  }
  0x26   : > { %457 = vmatmul.mubr.bf16.vlgmr.msra.gmra.mrb[0].mxu0 %v968_v21  ;;  %489 = vmatmul.mubr.bf16.vlgmr.msra.gmra.mrb[0].mxu1 %v971_v22 }
  0x27   : > { %464 = vmatprep.mubr.bf16.mxu0 %v974_v25  ;;  %496 = vmatprep.mubr.bf16.mxu1 %v976_v26 }
  0x29   : > { %589 = vperm.xlu0 %950, %v531_v40   ;;  %604 = vperm.xlu1 %951, %v534_v43  }
  0x2d   : > { %599 = vperm.xlu0 %950, %v533_v44   ;;  %614 = vperm.xlu1 %951, %v536_v47  }
  0x2e   : > { %465 = vmatmul.mubr.bf16.gmra.mrb[4].mxu0 %v978_v29  ;;  %497 = vmatmul.mubr.bf16.gmra.mrb[4].mxu1 %v979_v30 }
  0x2f   : > { %472 = vmatprep.mubr.bf16.mxu0 %v980_v33  ;;  %504 = vmatprep.mubr.bf16.mxu1 %v982_v34 }
  0x31   : > { %609 = vperm.xlu0 %950, %v535_v48  }
  0x36   : > { %473 = vmatmul.mubr.bf16.gmra.mrb[8].mxu0 %v984_v37  ;;  %505 = vmatmul.mubr.bf16.gmra.mrb[8].mxu1 %v985_v38 }
  0x37   : > { %480 = vmatprep.mubr.bf16.mxu0 %v986_v41  ;;  %512 = vmatprep.mubr.bf16.mxu1 %v988_v42 }
  0x3e   : > { %481 = vmatmul.mubr.bf16.gmra.mrb[12].mxu0 %v990_v45  ;;  %513 = vmatmul.mubr.bf16.gmra.mrb[12].mxu1 %v991_v46 }
  0x90   : > { %v550_v50 = vpop.permute.xlu1 %549 }
  0x94   : > { %v540_v49 = vpop.permute.xlu0 %539  ;;  %v555_v52 = vpop.permute.xlu1 %554 }
  0x98   : > { %v545_v51 = vpop.permute.xlu0 %544  ;;  %v1124_v54 = vpop.permute.xlu1 %564 }
  0x9c   : > { %v1122_v53 = vpop.permute.xlu0 %559  ;;  %v1128_v56 = vpop.permute.xlu1 %574 }
  0xa0   : > { %v1126_v55 = vpop.permute.xlu0 %569  ;;  %v585_v8 = vpop.permute.xlu1 %584 }
  0xa4   : > { %v580_v57 = vpop.permute.xlu0 %579  ;;  %v595_v30 = vpop.permute.xlu1 %594 }
  0xa8   : > { %v590_v13 = vpop.permute.xlu0 %589 }
  0xac   : > { %v600_v35 = vpop.permute.xlu0 %599 }
  0xf9   : > { %v877_v58 = vpop.f32.mrb[0].mxu0  ;;  %v901_v59 = vpop.f32.mrb[0].mxu1 }
  0xfa   : > { %v878_v60 = vpop.f32.mrb[1].mxu0  ;;  %v902_v61 = vpop.f32.mrb[1].mxu1 }
  0xfb   : > { %v879_v62 = vadd.f32 %v878_v60, %v877_v58  ;;  %v903_v63 = vadd.f32 %v902_v61, %v901_v59  ;;  %v880_v0 = vpop.f32.mrb[2].mxu0  ;;  %v904_v1 = vpop.f32.mrb[2].mxu1 }
  0xfc   : > { %v881_v2 = vpop.f32.mrb[3].mxu0  ;;  %v905_v3 = vpop.f32.mrb[3].mxu1 }
  0xfd   : > { %v617_v4 = vmul.f32 %v879_v62, %v540_v49  ;;  %v625_v5 = vmul.f32 %v903_v63, %v580_v57  ;;  %v882_v6 = vadd.f32 %v881_v2, %v880_v0  ;;  %v906_v7 = vadd.f32 %v905_v3, %v904_v1  ;;  %v610_v61 = vpop.permute.xlu0 %609 }
  0xff   : > { %v845_v9 = vpack.c.bf16 %v617_v4, %v617_v4  ;;  %v853_v10 = vpack.c.bf16 %v625_v5, %v625_v5  ;;  %v618_v11 = vmul.f32 %v882_v6, %v545_v51  ;;  %v626_v12 = vmul.f32 %v906_v7, %v585_v8 }
 0x101   : > { %698 = vst.msk [vmem:[%s1134_s5] sm:$0xf] %vm697_vm0, %v845_v9  ;;  %706 = vst.msk [vmem:[%s1134_s5 + $0x20] sm:$0xf] %vm697_vm0, %v853_v10  ;;  %v846_v14 = vpack.c.bf16 %v618_v11, %v618_v11  ;;  %v854_v15 = vpack.c.bf16 %v626_v12, %v626_v12  ;;  %v883_v16 = vpop.f32.mrb[4].mxu0  ;;  %v907_v17 = vpop.f32.mrb[4].mxu1 }
 0x102   : > { %v884_v18 = vpop.f32.mrb[5].mxu0  ;;  %v908_v19 = vpop.f32.mrb[5].mxu1 }
 0x103   : > { %699 = vst.msk [vmem:[%s1134_s5 + $0x4] sm:$0xf] %vm697_vm0, %v846_v14  ;;  %707 = vst.msk [vmem:[%s1134_s5 + $0x24] sm:$0xf] %vm697_vm0, %v854_v15  ;;  %v885_v20 = vadd.f32 %v884_v18, %v883_v16  ;;  %v909_v21 = vadd.f32 %v908_v19, %v907_v17  ;;  %v886_v22 = vpop.f32.mrb[6].mxu0  ;;  %v910_v23 = vpop.f32.mrb[6].mxu1 }
 0x104   : > { %v887_v24 = vpop.f32.mrb[7].mxu0  ;;  %v911_v25 = vpop.f32.mrb[7].mxu1 }
 0x105   : > { %v619_v26 = vmul.f32 %v885_v20, %v550_v50  ;;  %v627_v27 = vmul.f32 %v909_v21, %v590_v13  ;;  %v888_v28 = vadd.f32 %v887_v24, %v886_v22  ;;  %v912_v29 = vadd.f32 %v911_v25, %v910_v23 }
 0x107   : > { %v847_v31 = vpack.c.bf16 %v619_v26, %v619_v26  ;;  %v855_v32 = vpack.c.bf16 %v627_v27, %v627_v27  ;;  %v620_v33 = vmul.f32 %v888_v28, %v555_v52  ;;  %v628_v34 = vmul.f32 %v912_v29, %v595_v30  ;;  %v605_v52 = vpop.permute.xlu1 %604 }
 0x109   : > { %700 = vst.msk [vmem:[%s1134_s5 + $0x8] sm:$0xf] %vm697_vm0, %v847_v31  ;;  %708 = vst.msk [vmem:[%s1134_s5 + $0x28] sm:$0xf] %vm697_vm0, %v855_v32  ;;  %v848_v36 = vpack.c.bf16 %v620_v33, %v620_v33  ;;  %v856_v37 = vpack.c.bf16 %v628_v34, %v628_v34  ;;  %v889_v38 = vpop.f32.mrb[8].mxu0  ;;  %v913_v39 = vpop.f32.mrb[8].mxu1 }
 0x10a   : > { %v890_v40 = vpop.f32.mrb[9].mxu0  ;;  %v914_v41 = vpop.f32.mrb[9].mxu1 }
 0x10b   : > { %701 = vst.msk [vmem:[%s1134_s5 + $0xc] sm:$0xf] %vm697_vm0, %v848_v36  ;;  %709 = vst.msk [vmem:[%s1134_s5 + $0x2c] sm:$0xf] %vm697_vm0, %v856_v37  ;;  %v891_v42 = vadd.f32 %v890_v40, %v889_v38  ;;  %v915_v43 = vadd.f32 %v914_v41, %v913_v39  ;;  %v892_v44 = vpop.f32.mrb[10].mxu0  ;;  %v916_v45 = vpop.f32.mrb[10].mxu1 }
 0x10c   : > { %v893_v46 = vpop.f32.mrb[11].mxu0  ;;  %v917_v47 = vpop.f32.mrb[11].mxu1 }
 0x10d   : > { %v621_v48 = vmul.f32 %v891_v42, %v1122_v53  ;;  %v629_v49 = vmul.f32 %v915_v43, %v600_v35  ;;  %v894_v50 = vadd.f32 %v893_v46, %v892_v44  ;;  %v918_v51 = vadd.f32 %v917_v47, %v916_v45  ;;  %v615_v12 = vpop.permute.xlu1 %614 }
 0x10f   : > { %v849_v57 = vpack.c.bf16 %v621_v48, %v621_v48  ;;  %v857_v58 = vpack.c.bf16 %v629_v49, %v629_v49  ;;  %v622_v59 = vmul.f32 %v894_v50, %v1124_v54  ;;  %v630_v60 = vmul.f32 %v918_v51, %v605_v52 }
 0x111   : > { %702 = vst.msk [vmem:[%s1134_s5 + $0x10] sm:$0xf] %vm697_vm0, %v849_v57  ;;  %710 = vst.msk [vmem:[%s1134_s5 + $0x30] sm:$0xf] %vm697_vm0, %v857_v58  ;;  %v850_v62 = vpack.c.bf16 %v622_v59, %v622_v59  ;;  %v858_v63 = vpack.c.bf16 %v630_v60, %v630_v60  ;;  %v895_v0 = vpop.f32.mrb[12].mxu0  ;;  %v919_v53 = vpop.f32.mrb[12].mxu1 }
 0x112   : > { %v896_v1 = vpop.f32.mrb[13].mxu0  ;;  %v920_v2 = vpop.f32.mrb[13].mxu1 }
 0x113   : > { %703 = vst.msk [vmem:[%s1134_s5 + $0x14] sm:$0xf] %vm697_vm0, %v850_v62  ;;  %711 = vst.msk [vmem:[%s1134_s5 + $0x34] sm:$0xf] %vm697_vm0, %v858_v63  ;;  %v897_v3 = vadd.f32 %v896_v1, %v895_v0  ;;  %v921_v54 = vadd.f32 %v920_v2, %v919_v53  ;;  %v898_v4 = vpop.f32.mrb[14].mxu0  ;;  %v922_v5 = vpop.f32.mrb[14].mxu1 }
 0x114   : > { %v899_v6 = vpop.f32.mrb[15].mxu0  ;;  %v923_v7 = vpop.f32.mrb[15].mxu1 }
 0x115   : > { %v623_v8 = vmul.f32 %v897_v3, %v1126_v55  ;;  %v631_v9 = vmul.f32 %v921_v54, %v610_v61  ;;  %v900_v10 = vadd.f32 %v899_v6, %v898_v4  ;;  %v924_v11 = vadd.f32 %v923_v7, %v922_v5 }
 0x117   : > { %v851_v13 = vpack.c.bf16 %v623_v8, %v623_v8  ;;  %v859_v14 = vpack.c.bf16 %v631_v9, %v631_v9  ;;  %v624_v15 = vmul.f32 %v900_v10, %v1128_v56  ;;  %v632_v16 = vmul.f32 %v924_v11, %v615_v12 }
 0x119   : > { %704 = vst.msk [vmem:[%s1134_s5 + $0x18] sm:$0xf] %vm697_vm0, %v851_v13  ;;  %712 = vst.msk [vmem:[%s1134_s5 + $0x38] sm:$0xf] %vm697_vm0, %v859_v14  ;;  %v852_v17 = vpack.c.bf16 %v624_v15, %v624_v15  ;;  %v860_v18 = vpack.c.bf16 %v632_v16, %v632_v16 }
 0x11b   : > { %705 = vst.msk [vmem:[%s1134_s5 + $0x1c] sm:$0xf] %vm697_vm0, %v852_v17  ;;  %713 = vst.msk [vmem:[%s1134_s5 + $0x3c] sm:$0xf] %vm697_vm0, %v860_v18 }
 0x11c PF: > { %s13_s12 = sadd.s32 1, %s998_s12  }
 0x11d   : > { %p10_p4 = scmp.ge.s32.totalorder %s13_s12, 4  }
 0x11f   :  { %12 = sbr.rel (!%p10_p4) target bundleno = 1 (0x1), region = 65 }

</bundles_post_ra>
